<compile_context>
chip_gen: v7x
topology: tpu7x:2x2x1
jax: 0.10.0
libtpu: 0.0.40
codegen_flags: <defaults>
</compile_context>

<pallas_src>
import functools
import numpy as np
import jax
import jax.numpy as jnp
from jax.experimental import pallas as pl
from jax.experimental.pallas import tpu as pltpu

_LANES = 512            # lane width of every block (multiple of 128)


# ---------------------------------------------------------------------------
# Deterministic parameter construction (mirrors TrapezoidNetwork.__init__)
# ---------------------------------------------------------------------------
def build_params():
    K = np.array([-2.0, 2.0], dtype=np.float32)
    P = np.array([-4.0, -2.0], dtype=np.float32)
    Q = np.array([8.0, 2.0], dtype=np.float32)
    R = np.array([2.0, 4.0], dtype=np.float32)

    def edge(p0, p1):
        # matches the torch code: a = p1.y - p0.y, b = -(p1.x - p0.x),
        # c = p1.x * p0.y - p0.x * p1.y
        a = p1[1] - p0[1]
        b = -(p1[0] - p0[0])
        c = p1[0] * p0[1] - p0[0] * p1[1]
        return float(a), float(b), float(c)

    inside = (1.0, 1.0)
    edges = [edge(P, K), edge(K, R), edge(R, Q), edge(Q, P)]
    ws, bs = [], []
    for a, b, c in edges:
        if a * inside[0] + b * inside[1] + c < 0:
            a, b, c = -a, -b, -c
        ws.append([a, b])
        bs.append(c)
    return np.array(ws, np.float32), np.array(bs, np.float32)


_WEIGHTS, _BIASES = build_params()
_COEFFS = tuple((float(_WEIGHTS[i, 0]), float(_WEIGHTS[i, 1]), float(_BIASES[i]))
                for i in range(_WEIGHTS.shape[0]))


# ---------------------------------------------------------------------------
# Kernel: coefficients are immediates -> pure VPU FMAs + elementwise mins.
# ---------------------------------------------------------------------------
def _trapezoid_kernel(x_ref, y_ref, o_ref):
    xv = x_ref[...]                      # (tile_rows, LANES): full (8,128) vregs
    yv = y_ref[...]
    a, b, c = _COEFFS[0]
    mn = a * xv + b * yv + c
    for a, b, c in _COEFFS[1:]:          # 3 more FMAs + 3 elementwise mins
        mn = jnp.minimum(mn, a * xv + b * yv + c)
    o_ref[...] = mn                      # unmasked, lane+sublane-dense store


# ---------------------------------------------------------------------------
# Tile planning: VMEM-aware per generation.
# ---------------------------------------------------------------------------
@functools.lru_cache(maxsize=None)
def _vmem_plan():
    try:
        phys = int(pltpu.get_tpu_info().vmem_capacity_bytes)
    except Exception:
        phys = 64 << 20                              # conservative (v7x-sized)
    limit = max(32 << 20, min(phys - (16 << 20), 100 << 20))
    # Double-buffered working set: 2 bufs x (x + y + out) x tile x 4 B <= limit/2
    rows_max = (limit // 2) // (2 * 3 * _LANES * 4)
    rows_max = max(8, (rows_max // 8) * 8)
    return min(rows_max, 4096), limit


def _choose_tiling(n_points):
    rows = max(8, -(-n_points // _LANES))            # ceil(n / LANES)
    rows = ((rows + 7) // 8) * 8                     # sublane multiple
    rows_max, limit = _vmem_plan()
    if rows >= 32:
        # >= 4 grid steps: both v7x TensorCores get work, DMA overlaps compute.
        tile_rows = max(8, min(rows_max, ((rows // 4) // 8) * 8))
    else:
        tile_rows = rows
    rows_pad = ((rows + tile_rows - 1) // tile_rows) * tile_rows
    return rows_pad, tile_rows, limit


# ---------------------------------------------------------------------------
# Planar fast path: xs, ys already shaped (rows, lanes) -> zero layout cost.
# ---------------------------------------------------------------------------
def trapezoid_forward_planar(xs, ys, *, tile_rows, vmem_limit):
    rows, lanes = xs.shape
    grid = (rows // tile_rows,)
    return pl.pallas_call(
        _trapezoid_kernel,
        out_shape=jax.ShapeDtypeStruct((rows, lanes), jnp.float32),
        grid=grid,
        in_specs=[pl.BlockSpec((tile_rows, lanes), lambda i: (i, 0)),
                  pl.BlockSpec((tile_rows, lanes), lambda i: (i, 0))],
        out_specs=pl.BlockSpec((tile_rows, lanes), lambda i: (i, 0)),
        compiler_params=pltpu.CompilerParams(
            dimension_semantics=("parallel",),
            vmem_limit_bytes=vmem_limit,
        ),
    )(xs, ys)


# ---------------------------------------------------------------------------
# Module-compatible wrapper: x is (N, 2) (or (2,)), returns (N,) mins.
# ---------------------------------------------------------------------------
def trapezoid_forward(x):
    x = jnp.asarray(x, jnp.float32)
    if x.ndim == 1:
        x = x[None, :]
    n = x.shape[0]

    rows_pad, tile_rows, vmem_limit = _choose_tiling(n)
    n_pad = rows_pad * _LANES

    # Single fused pad + transpose de-interleave; the reshape to planar
    # (rows, LANES) slabs is a free bitcast.  (Padded tail = zeros -> min is
    # the constant 8.0, sliced off below.)
    planes = jnp.pad(x, ((0, n_pad - n), (0, 0))).T.reshape(2, rows_pad, _LANES)

    out = trapezoid_forward_planar(planes[0], planes[1],
                                   tile_rows=tile_rows, vmem_limit=vmem_limit)
    return out.reshape(-1)[:n]           # (N,), matches torch.min(...)[0]


# ---------------------------------------------------------------------------
if __name__ == "__main__":
    key = jax.random.PRNGKey(0)
    w = jnp.asarray(_WEIGHTS)
    b = jnp.asarray(_BIASES)

    # Small batch of 2-D points, consistent with the module's (N, 2) input.
    x = jax.random.uniform(key, (8, 2), dtype=jnp.float32, minval=-6.0, maxval=10.0)
    out = jax.block_until_ready(trapezoid_forward(x))
    ref = jnp.min(x @ w.T + b, axis=1)
    np.testing.assert_allclose(np.asarray(out), np.asarray(ref), rtol=1e-5, atol=1e-5)

    # Ragged, multi-block case (exercises padding + >1 grid step).
    x2 = jax.random.uniform(jax.random.PRNGKey(1), (20000, 2), dtype=jnp.float32,
                            minval=-6.0, maxval=10.0)
    out2 = jax.block_until_ready(trapezoid_forward(x2))
    ref2 = jnp.min(x2 @ w.T + b, axis=1)
    np.testing.assert_allclose(np.asarray(out2), np.asarray(ref2), rtol=1e-5, atol=1e-5)

    # 1-D input path (the module's unsqueeze branch).
    x1 = jnp.array([1.0, 1.0], jnp.float32)
    out1 = jax.block_until_ready(trapezoid_forward(x1))
    ref1 = jnp.min(x1[None, :] @ w.T + b, axis=1)
    np.testing.assert_allclose(np.asarray(out1), np.asarray(ref1), rtol=1e-5, atol=1e-5)

    print("KERNEL_OK")
</pallas_src>

<mosaic_0001>
module attributes {stable_mosaic.version = 11 : i64} {
  func.func @_trapezoid_kernel(%arg0: i32, %arg1: memref<8x512xf32, #tpu.memory_space<vmem>>, %arg2: memref<8x512xf32, #tpu.memory_space<vmem>>, %arg3: memref<8x512xf32, #tpu.memory_space<vmem>>) attributes {dimension_semantics = [#tpu.dimension_semantics<parallel>], iteration_bounds = array<i64: 1>, scalar_prefetch = 0 : i64, scratch_operands = 0 : i64, tpu.core_type = #tpu.core_type<tc>, window_params = [{transform_indices = @transform_0, window_bounds = array<i64: 8, 512>}, {transform_indices = @transform_1, window_bounds = array<i64: 8, 512>}, {transform_indices = @transform_2, window_bounds = array<i64: 8, 512>}]} {
    %c0 = arith.constant 0 : index
    %c0_0 = arith.constant 0 : index
    %0 = vector.load %arg1[%c0, %c0_0] : memref<8x512xf32, #tpu.memory_space<vmem>>, vector<8x512xf32>
    %c0_1 = arith.constant 0 : index
    %c0_2 = arith.constant 0 : index
    %1 = vector.load %arg2[%c0_1, %c0_2] : memref<8x512xf32, #tpu.memory_space<vmem>>, vector<8x512xf32>
    %cst = arith.constant 4.000000e+00 : f32
    %2 = vector.broadcast %cst : f32 to vector<8x512xf32>
    %3 = arith.mulf %2, %0 : vector<8x512xf32>
    %cst_3 = arith.constant -2.000000e+00 : f32
    %4 = vector.broadcast %cst_3 : f32 to vector<8x512xf32>
    %5 = arith.mulf %4, %1 : vector<8x512xf32>
    %6 = arith.addf %3, %5 : vector<8x512xf32>
    %cst_4 = arith.constant 1.200000e+01 : f32
    %7 = vector.broadcast %cst_4 : f32 to vector<8x512xf32>
    %8 = arith.addf %6, %7 : vector<8x512xf32>
    %cst_5 = arith.constant 2.000000e+00 : f32
    %9 = vector.broadcast %cst_5 : f32 to vector<8x512xf32>
    %10 = arith.mulf %9, %0 : vector<8x512xf32>
    %cst_6 = arith.constant -4.000000e+00 : f32
    %11 = vector.broadcast %cst_6 : f32 to vector<8x512xf32>
    %12 = arith.mulf %11, %1 : vector<8x512xf32>
    %13 = arith.addf %10, %12 : vector<8x512xf32>
    %cst_7 = arith.constant 1.200000e+01 : f32
    %14 = vector.broadcast %cst_7 : f32 to vector<8x512xf32>
    %15 = arith.addf %13, %14 : vector<8x512xf32>
    %16 = arith.minimumf %8, %15 : vector<8x512xf32>
    %cst_8 = arith.constant -2.000000e+00 : f32
    %17 = vector.broadcast %cst_8 : f32 to vector<8x512xf32>
    %18 = arith.mulf %17, %0 : vector<8x512xf32>
    %cst_9 = arith.constant -6.000000e+00 : f32
    %19 = vector.broadcast %cst_9 : f32 to vector<8x512xf32>
    %20 = arith.mulf %19, %1 : vector<8x512xf32>
    %21 = arith.addf %18, %20 : vector<8x512xf32>
    %cst_10 = arith.constant 2.800000e+01 : f32
    %22 = vector.broadcast %cst_10 : f32 to vector<8x512xf32>
    %23 = arith.addf %21, %22 : vector<8x512xf32>
    %24 = arith.minimumf %16, %23 : vector<8x512xf32>
    %cst_11 = arith.constant -4.000000e+00 : f32
    %25 = vector.broadcast %cst_11 : f32 to vector<8x512xf32>
    %26 = arith.mulf %25, %0 : vector<8x512xf32>
    %cst_12 = arith.constant 1.200000e+01 : f32
    %27 = vector.broadcast %cst_12 : f32 to vector<8x512xf32>
    %28 = arith.mulf %27, %1 : vector<8x512xf32>
    %29 = arith.addf %26, %28 : vector<8x512xf32>
    %cst_13 = arith.constant 8.000000e+00 : f32
    %30 = vector.broadcast %cst_13 : f32 to vector<8x512xf32>
    %31 = arith.addf %29, %30 : vector<8x512xf32>
    %32 = arith.minimumf %24, %31 : vector<8x512xf32>
    %c0_14 = arith.constant 0 : index
    %c0_15 = arith.constant 0 : index
    %33 = vector.load %arg3[%c0_14, %c0_15] : memref<8x512xf32, #tpu.memory_space<vmem>>, vector<8x512xf32>
    tpu.vector_store %arg3[%c0_14, %c0_15], %32 {strides = array<i32>} : memref<8x512xf32, #tpu.memory_space<vmem>>, vector<8x512xf32>,
    return
  }
  func.func @transform_0(%arg0: i32) -> (i32, i32) {
    %c0_i32 = arith.constant 0 : i32
    %c0_i32_0 = arith.constant 0 : i32
    return %arg0, %c0_i32 : i32, i32
  }
  func.func @transform_1(%arg0: i32) -> (i32, i32) {
    %c0_i32 = arith.constant 0 : i32
    %c0_i32_0 = arith.constant 0 : i32
    return %arg0, %c0_i32 : i32, i32
  }
  func.func @transform_2(%arg0: i32) -> (i32, i32) {
    %c0_i32 = arith.constant 0 : i32
    %c0_i32_0 = arith.constant 0 : i32
    return %arg0, %c0_i32 : i32, i32
  }
}

</mosaic_0001>

<bundles_post_ra>
// kernel: tpu_custom_call.1
= control target key start
LH: loop header
LB: loop body
LE: loop exit
PB: predicated region body
PF: predicated region fallthrough
CT: control target
= control target key end

     0   :  { %7 = vsyncpa [#allocation3], 0  ;;  %s269_s0 = inlined_call_operand.hbm [shape: f32[8,512], index: 0, kind: input, shape index: {}]   ;;  %s270_s1 = inlined_call_operand.hbm [shape: f32[8,512], index: 1, kind: input, shape index: {}]   ;;  %s271_s2 = inlined_call_operand.hbm [shape: f32[8,512], index: 2, kind: output, shape index: {}]  }
   0x1   :  { %8 = vsyncpa [#allocation6], 0 }
   0x2   :  { %9 = vsyncpa [#allocation4], 0  ;;  %s215_s9 = smov [#allocation2]   ;;  %s216_s11 = smov [#allocation5]  }
   0x3   :  { %s16_s10 = sshll.u32 %s215_s9, 4  ;;  %s26_s12 = sshll.u32 %s216_s11, 4  ;;  %s17_s10 = int_to_ptr.vmem [resolvable:$true] %s16_s10  ;;  %s27_s12 = int_to_ptr.vmem [resolvable:$true] %s26_s12 }
   0x4   :  { %s143_s15 = scalar_lea.hbm %s269_s0, 512 }
   0x5   :  { %p144_p0 = scmp.ne.s32.totalorder %s269_s0, %s143_s15  ;;  %p147_p1 = scmp.lt.u32.totalorder %s143_s15, %s269_s0 }
   0x7   :  { %p149_p2 = pnand %p147_p1, %p144_p0 }
   0x9   :  { %152 = shalt.err (!%p149_p2)
}
   0xa   :  { %s153_s20 = scalar_lea.vmem %s17_s10, 512  ;;  %p158_p4 = scmp.lt.s32.totalorder %s17_s10, %s17_s10 }
   0xb   :  { %p154_p3 = scmp.ne.s32.totalorder %s17_s10, %s153_s20  ;;  %p159_p5 = scmp.lt.s32.totalorder %s153_s20, %s153_s20 }
   0xd   :  { %p160_p6 = por %p159_p5, %p158_p4 }
   0xf   :  { %p161_p7 = pnand %p160_p6, %p154_p3 }
  0x11   :  { %164 = shalt.err (!%p161_p7)
}
  0x12   :  { %19 = dma.hbm_to_vmem [thread:$0]  %s269_s0, 512, %s17_s10, [#allocation3]  }
  0x13   :  { %s165_s25 = scalar_lea.hbm %s270_s1, 512 }
  0x14   :  { %p166_p8 = scmp.ne.s32.totalorder %s270_s1, %s165_s25  ;;  %p169_p9 = scmp.lt.u32.totalorder %s165_s25, %s270_s1 }
  0x16   :  { %p171_p10 = pnand %p169_p9, %p166_p8 }
  0x18   :  { %174 = shalt.err (!%p171_p10)
}
  0x19   :  { %s175_s30 = scalar_lea.vmem %s27_s12, 512  ;;  %p180_p12 = scmp.lt.s32.totalorder %s27_s12, %s27_s12 }
  0x1a   :  { %p176_p11 = scmp.ne.s32.totalorder %s27_s12, %s175_s30  ;;  %p181_p13 = scmp.lt.s32.totalorder %s175_s30, %s175_s30 }
  0x1c   :  { %p182_p0 = por %p181_p13, %p180_p12 }
  0x1e   :  { %p183_p1 = pnand %p182_p0, %p176_p11 }
  0x20   :  { %186 = shalt.err (!%p183_p1)
}
  0x21   :  { %29 = dma.hbm_to_vmem [thread:$0]  %s270_s1, 512, %s27_s12, [#allocation6]  }
  0x22   :  { %209 = dma.done.wait [#allocation3], 512  }
  0x23   :  { %210 = vsyncadd [#allocation3], 4294966784 }
  0x24   :  { %211 = dma.done.wait [#allocation6], 512  }
  0x25   :  { %212 = vsyncadd [#allocation6], 4294966784  ;;  %v36_v0 = vld [vmem:[#allocation2] sm:$0xff]  ;;  %v37_v2 = vld [vmem:[#allocation2 + $0x8] sm:$0xff]  ;;  %s217_s1 = smov [#allocation7]  }
  0x26   :  { %v40_v1 = vld [vmem:[#allocation5] sm:$0xff]  ;;  %v44_v3 = vmul.f32 4.0, %v36_v0  ;;  %v60_v5 = vmul.f32 2.0, %v36_v0  ;;  %v41_v7 = vld [vmem:[#allocation5 + $0x8] sm:$0xff]  ;;  %v80_v8 = vmul.f32 -2.0, %v36_v0  ;;  %v100_v10 = vmul.f32 -4.0, %v36_v0 }
  0x27   :  { %v48_v4 = vmul.f32 -2.0, %v40_v1  ;;  %v64_v6 = vmul.f32 -4.0, %v40_v1  ;;  %v84_v9 = vmul.f32 -6.0, %v40_v1  ;;  %v104_v11 = vmul.f32 12.0, %v40_v1  ;;  %v38_v24 = vld [vmem:[#allocation2 + $0x10] sm:$0xff]  ;;  %v39_v46 = vld [vmem:[#allocation2 + $0x18] sm:$0xff] }
  0x28   :  { %v45_v14 = vmul.f32 4.0, %v37_v2  ;;  %v49_v15 = vmul.f32 -2.0, %v41_v7  ;;  %v61_v18 = vmul.f32 2.0, %v37_v2  ;;  %v65_v19 = vmul.f32 -4.0, %v41_v7  ;;  %v42_v25 = vld [vmem:[#allocation5 + $0x10] sm:$0xff]  ;;  %v43_v47 = vld [vmem:[#allocation5 + $0x18] sm:$0xff] }
  0x29   :  { %v52_v12 = vadd.f32 %v48_v4, %v44_v3  ;;  %v68_v13 = vadd.f32 %v64_v6, %v60_v5  ;;  %v88_v16 = vadd.f32 %v84_v9, %v80_v8  ;;  %v108_v17 = vadd.f32 %v104_v11, %v100_v10  ;;  %s130_s4 = sshll.u32 %s217_s1, 4  ;;  %s131_s4 = int_to_ptr.vmem [resolvable:$true] %s130_s4 }
  0x2a   :  { %v53_v22 = vadd.f32 %v49_v15, %v45_v14  ;;  %v81_v23 = vmul.f32 -2.0, %v37_v2  ;;  %v69_v28 = vadd.f32 %v65_v19, %v61_v18  ;;  %v85_v29 = vmul.f32 -6.0, %v41_v7  ;;  %s187_s5 = scalar_lea.vmem %s131_s4, 512  ;;  %p192_p3 = scmp.lt.s32.totalorder %s131_s4, %s131_s4 }
  0x2b   :  { %v56_v20 = vadd.f32 12.0, %v52_v12  ;;  %v72_v21 = vadd.f32 12.0, %v68_v13  ;;  %v92_v26 = vadd.f32 28.0, %v88_v16  ;;  %v112_v27 = vadd.f32 8.0, %v108_v17  ;;  %p188_p2 = scmp.ne.s32.totalorder %s131_s4, %s187_s5  ;;  %p193_p4 = scmp.lt.s32.totalorder %s187_s5, %s187_s5 }
  0x2c   :  { %v57_v31 = vadd.f32 12.0, %v53_v22  ;;  %v101_v32 = vmul.f32 -4.0, %v37_v2  ;;  %v105_v33 = vmul.f32 12.0, %v41_v7  ;;  %v73_v34 = vadd.f32 12.0, %v69_v28 }
  0x2d   :  { %v76_v30 = vmin.f32 %v56_v20, %v72_v21  ;;  %v89_v35 = vadd.f32 %v85_v29, %v81_v23  ;;  %v46_v36 = vmul.f32 4.0, %v38_v24  ;;  %v50_v37 = vmul.f32 -2.0, %v42_v25  ;;  %p194_p5 = por %p193_p4, %p192_p3 }
  0x2e   :  { %v109_v39 = vadd.f32 %v105_v33, %v101_v32  ;;  %v62_v40 = vmul.f32 2.0, %v38_v24  ;;  %v66_v41 = vmul.f32 -4.0, %v42_v25  ;;  %v77_v42 = vmin.f32 %v57_v31, %v73_v34 }
  0x2f   :  { %v96_v38 = vmin.f32 %v76_v30, %v92_v26  ;;  %v93_v43 = vadd.f32 28.0, %v89_v35  ;;  %v54_v44 = vadd.f32 %v50_v37, %v46_v36  ;;  %v82_v45 = vmul.f32 -2.0, %v38_v24  ;;  %p195_p6 = pnand %p194_p5, %p188_p2 }
  0x30   :  { %v113_v49 = vadd.f32 8.0, %v109_v39  ;;  %v70_v50 = vadd.f32 %v66_v41, %v62_v40  ;;  %v86_v51 = vmul.f32 -6.0, %v42_v25  ;;  %v102_v54 = vmul.f32 -4.0, %v38_v24 }
  0x31   :  { %v116_v48 = vmin.f32 %v96_v38, %v112_v27  ;;  %v97_v52 = vmin.f32 %v77_v42, %v93_v43  ;;  %v58_v53 = vadd.f32 12.0, %v54_v44  ;;  %v106_v55 = vmul.f32 12.0, %v42_v25 }
  0x32   :  { %v74_v56 = vadd.f32 12.0, %v70_v50  ;;  %v90_v57 = vadd.f32 %v86_v51, %v82_v45  ;;  %v47_v58 = vmul.f32 4.0, %v39_v46  ;;  %v51_v59 = vmul.f32 -2.0, %v43_v47 }
  0x33   :  { %120 = vst [vmem:[#allocation7] sm:$0xff] %v116_v48  ;;  %v117_v60 = vmin.f32 %v97_v52, %v113_v49  ;;  %v110_v61 = vadd.f32 %v106_v55, %v102_v54  ;;  %v63_v62 = vmul.f32 2.0, %v39_v46  ;;  %v67_v63 = vmul.f32 -4.0, %v43_v47 }
  0x34   :  { %v78_v0 = vmin.f32 %v58_v53, %v74_v56  ;;  %v94_v1 = vadd.f32 28.0, %v90_v57  ;;  %v55_v2 = vadd.f32 %v51_v59, %v47_v58  ;;  %v83_v3 = vmul.f32 -2.0, %v39_v46 }
  0x35   :  { %121 = vst [vmem:[#allocation7 + $0x8] sm:$0xff] %v117_v60  ;;  %v114_v4 = vadd.f32 8.0, %v110_v61  ;;  %v71_v5 = vadd.f32 %v67_v63, %v63_v62  ;;  %v87_v6 = vmul.f32 -6.0, %v43_v47  ;;  %v103_v7 = vmul.f32 -4.0, %v39_v46 }
  0x36   :  { %v98_v8 = vmin.f32 %v78_v0, %v94_v1  ;;  %v59_v9 = vadd.f32 12.0, %v55_v2  ;;  %v107_v10 = vmul.f32 12.0, %v43_v47 }
  0x37   :  { %v75_v11 = vadd.f32 12.0, %v71_v5  ;;  %v91_v12 = vadd.f32 %v87_v6, %v83_v3 }
  0x38   :  { %v118_v13 = vmin.f32 %v98_v8, %v114_v4  ;;  %v111_v14 = vadd.f32 %v107_v10, %v103_v7 }
  0x39   :  { %v79_v15 = vmin.f32 %v59_v9, %v75_v11  ;;  %v95_v16 = vadd.f32 28.0, %v91_v12 }
  0x3a   :  { %122 = vst [vmem:[#allocation7 + $0x10] sm:$0xff] %v118_v13  ;;  %v115_v17 = vadd.f32 8.0, %v111_v14 }
  0x3b   :  { %v99_v18 = vmin.f32 %v79_v15, %v95_v16 }
  0x3d   :  { %v119_v19 = vmin.f32 %v99_v18, %v115_v17 }
  0x3f   :  { %123 = vst [vmem:[#allocation7 + $0x18] sm:$0xff] %v119_v19 }
  0x40   :  { %198 = shalt.err (!%p195_p6)
}
  0x41   :  { %s199_s8 = scalar_lea.hbm %s271_s2, 512 }
  0x42   :  { %p200_p7 = scmp.ne.s32.totalorder %s271_s2, %s199_s8  ;;  %p203_p8 = scmp.lt.u32.totalorder %s199_s8, %s271_s2 }
  0x44   :  { %p205_p9 = pnand %p203_p8, %p200_p7 }
  0x46   :  { %208 = shalt.err (!%p205_p9)
}
  0x47   :  { %133 = dma.vmem_to_hbm [thread:$0]  %s131_s4, 512, %s271_s2, [#allocation4]  }
  0x48   :  { %213 = dma.done.wait [#allocation4], 512  }
  0x49   :  { %214 = vsyncadd [#allocation4], 4294966784 }
  0x4a   :  { %137 = vsyncpa [#allocation3], 1 }
  0x4b   :  { %138 = vsyncpa [#allocation6], 1 }
  0x4c   :  { %139 = vsyncpa [#allocation4], 1 }

</bundles_post_ra>
